<compile_context>
chip_gen: v6e
topology: v6e:2x2x1
jax: 0.10.0
libtpu: 0.0.40
codegen_flags: <defaults>
</compile_context>

<pallas_src>
import functools
import math

import jax
import jax.numpy as jnp
from jax.experimental import pallas as pl
from jax.experimental.pallas import tpu as pltpu


def _embed_kernel(x_ref, w_ref, b_ref, o_ref, *, compute_dtype):
    # x_ref: (bB, L, bn)  input tile (batch block, seq_len, n_vars block)
    # w_ref: (L, D)       pre-transposed value-embedding weight, VMEM-resident
    # b_ref: (1, D)       bias (f32), VMEM-resident
    # o_ref: (bB, bn, D)  output tile
    bB, L, bn = x_ref.shape
    D = o_ref.shape[-1]

    x = x_ref[...]
    if compute_dtype is not None and x.dtype != compute_dtype:
        x = x.astype(compute_dtype)          # only the x tile is cast per step

    # permute(0, 2, 1) fused as a per-tile XLU transpose; merging (bB, bn) into
    # one matmul M dimension is a leading-dim reshape in VMEM.
    lhs = jnp.swapaxes(x, 1, 2).reshape(bB * bn, L)            # (M, L)

    # Plain (M, L) @ (L, D): lhs last dim contracts rhs first dim, so no
    # in-kernel weight transpose. Accumulate in f32 on the MXU.
    y = jnp.dot(lhs, w_ref[...], preferred_element_type=jnp.float32)
    y = y + b_ref[...]                                         # bias add in f32

    o_ref[...] = y.reshape(bB, bn, D).astype(o_ref.dtype)


def _choose_blocks(B, L, N, D, x_itemsize, w_itemsize, out_itemsize,
                   vmem_budget=20 << 20, m_target=256, m_cap=4096):
    """Pick (batch block, variate block) sized per the VMEM budget."""
    # Variate block: largest lane-aligned divisor of N, else full extent
    # (a full-extent block always satisfies the (8, 128) BlockSpec rule).
    bn = N
    for cand in (512, 384, 256, 128):
        if N >= cand and N % cand == 0:
            bn = cand
            break

    resident = L * D * w_itemsize + D * 4      # weight + bias stay in VMEM

    def fits(bb):
        tiles = 2 * bb * L * bn * x_itemsize + 2 * bb * bn * D * out_itemsize
        return resident + tiles <= vmem_budget

    divisors = [d for d in range(1, B + 1) if B % d == 0]

    # Batch block: grow until the merged matmul M dim reaches the MXU target
    # (256 covers the v6e/v7x 256x256 MXU; >=128 suffices on v5e) or the
    # VMEM budget / M cap is hit.
    bB = 1
    for d in divisors:
        if not fits(d) or d * bn > m_cap:
            break
        bB = d
        if d * bn >= m_target:
            break

    # v7x shards the "parallel" grid axes across its 2 TensorCores: keep at
    # least 2 grid steps whenever the problem size allows it.
    while (B // bB) * (N // bn) < 2 and bB > 1:
        bB = max(d for d in divisors if d < bB)

    return bB, bn


def data_embedding_inverted(x, weight, bias, x_mark=None, *,
                            compute_dtype=None, out_dtype=None):
    """out = x.permute(0, 2, 1) @ weight.T + bias  (dropout = identity).

    x      : (B, seq_len, n_vars)
    weight : (d_model, seq_len)   nn.Linear(seq_len, d_model) weight
    bias   : (d_model,)
    compute_dtype : optional matmul dtype (e.g. jnp.bfloat16 for v5e/v6e/v7x)
    out_dtype     : optional output dtype (e.g. jnp.bfloat16 to halve writeback)
    """
    del x_mark  # the given module's forward ignores x_mark
    B, L, N = x.shape
    D, L_w = weight.shape
    assert L_w == L, "weight must be (d_model, seq_len)"

    out_dtype = x.dtype if out_dtype is None else out_dtype

    # One-time wrapper-side parameter prep (paid once, not per grid step):
    #   * pre-transpose the weight so the kernel contracts (M,L)@(L,D),
    #   * cast it once to the compute dtype if requested.
    w_t = weight.T                                            # (L, D)
    if compute_dtype is not None:
        w_t = w_t.astype(compute_dtype)
    bias2d = bias.astype(jnp.float32).reshape(1, D)           # f32 bias add

    bB, bn = _choose_blocks(B, L, N, D,
                            x.dtype.itemsize, w_t.dtype.itemsize,
                            jnp.dtype(out_dtype).itemsize)

    vmem_est = (2 * bB * L * bn * x.dtype.itemsize
                + 2 * bB * bn * D * jnp.dtype(out_dtype).itemsize
                + L * D * w_t.dtype.itemsize + D * 4)
    vmem_limit = int(min(max(2 * vmem_est + (1 << 20), 32 << 20), 48 << 20))

    kernel = functools.partial(_embed_kernel, compute_dtype=compute_dtype)
    return pl.pallas_call(
        kernel,
        out_shape=jax.ShapeDtypeStruct((B, N, D), out_dtype),
        grid_spec=pltpu.PrefetchScalarGridSpec(
            num_scalar_prefetch=0,
            grid=(B // bB, N // bn),
            in_specs=[
                # x tile; pipeline_mode=pl.Buffered(3) could deepen prefetch if
                # a trace showed exposed DMA waits (default double-buffering).
                pl.BlockSpec((bB, L, bn), lambda i, j: (i, 0, j)),
                # Constant index_maps -> weight & bias DMA'd once, stay in VMEM.
                pl.BlockSpec((L, D), lambda i, j: (0, 0)),
                pl.BlockSpec((1, D), lambda i, j: (0, 0)),
            ],
            out_specs=pl.BlockSpec((bB, bn, D), lambda i, j: (i, j, 0)),
        ),
        compiler_params=pltpu.CompilerParams(
            dimension_semantics=("parallel", "parallel"),
            vmem_limit_bytes=vmem_limit),
    )(x, w_t, bias2d)


def reference_data_embedding_inverted(x, weight, bias):
    # Dropout is identity in eval mode.
    return jnp.swapaxes(x, 1, 2) @ weight.T + bias


if __name__ == "__main__":
    B, seq_len, n_vars, d_model = 2, 16, 8, 32

    key = jax.random.PRNGKey(0)
    kx, kw, kb = jax.random.split(key, 3)

    # nn.Linear(seq_len, d_model)-style deterministic init.
    bound = 1.0 / math.sqrt(seq_len)
    weight = jax.random.uniform(kw, (d_model, seq_len), jnp.float32, -bound, bound)
    bias = jax.random.uniform(kb, (d_model,), jnp.float32, -bound, bound)
    x = jax.random.normal(kx, (B, seq_len, n_vars), jnp.float32)

    out = data_embedding_inverted(x, weight, bias, x_mark=None)
    out = jax.block_until_ready(out)

    ref = reference_data_embedding_inverted(x, weight, bias)
    assert out.shape == (B, n_vars, d_model)
    assert jnp.allclose(out, ref, rtol=1e-4, atol=1e-4), "mismatch vs reference"

    print("KERNEL_OK")
</pallas_src>

<mosaic_0001>
module attributes {stable_mosaic.version = 11 : i64} {
  func.func @_embed_kernel(%arg0: i32, %arg1: i32, %arg2: memref<1x16x8xf32, #tpu.memory_space<vmem>>, %arg3: memref<16x32xf32, #tpu.memory_space<vmem>>, %arg4: memref<1x32xf32, #tpu.memory_space<vmem>>, %arg5: memref<1x8x32xf32, #tpu.memory_space<vmem>>) attributes {dimension_semantics = [#tpu.dimension_semantics<parallel>, #tpu.dimension_semantics<parallel>], iteration_bounds = array<i64: 2, 1>, scalar_prefetch = 0 : i64, scratch_operands = 0 : i64, tpu.core_type = #tpu.core_type<tc>, window_params = [{transform_indices = @transform_0, window_bounds = array<i64: 1, 16, 8>}, {pipeline_mode = #tpu.pipeline_mode<synchronous>, transform_indices = @transform_1, window_bounds = array<i64: 16, 32>}, {pipeline_mode = #tpu.pipeline_mode<synchronous>, transform_indices = @transform_2, window_bounds = array<i64: 1, 32>}, {transform_indices = @transform_3, window_bounds = array<i64: 1, 8, 32>}]} {
    %c0 = arith.constant 0 : index
    %c0_0 = arith.constant 0 : index
    %c0_1 = arith.constant 0 : index
    %0 = vector.load %arg2[%c0, %c0_0, %c0_1] : memref<1x16x8xf32, #tpu.memory_space<vmem>>, vector<1x16x8xf32>
    %1 = tpu.transpose %0, [0, 2, 1] : vector<1x16x8xf32> -> vector<1x8x16xf32>
    %2 = vector.shape_cast %1 : vector<1x8x16xf32> to vector<8x16xf32>
    %c0_2 = arith.constant 0 : index
    %c0_3 = arith.constant 0 : index
    %3 = vector.load %arg3[%c0_2, %c0_3] : memref<16x32xf32, #tpu.memory_space<vmem>>, vector<16x32xf32>
    %cst = arith.constant dense<0.000000e+00> : vector<8x32xf32>
    %4 = tpu.matmul %2, %3, %cst {dimension_numbers = #tpu.dot_dimension_numbers<[1], [0], [0], [1], [0, 0, 1, 1], [], []>} : vector<8x16xf32>, vector<16x32xf32>, vector<8x32xf32> -> vector<8x32xf32>
    %c0_4 = arith.constant 0 : index
    %c0_5 = arith.constant 0 : index
    %5 = vector.load %arg4[%c0_4, %c0_5] : memref<1x32xf32, #tpu.memory_space<vmem>>, vector<1x32xf32>
    %6 = vector.broadcast %5 : vector<1x32xf32> to vector<8x32xf32>
    %7 = arith.addf %4, %6 : vector<8x32xf32>
    %8 = vector.shape_cast %7 : vector<8x32xf32> to vector<1x8x32xf32>
    %c0_6 = arith.constant 0 : index
    %c0_7 = arith.constant 0 : index
    %c0_8 = arith.constant 0 : index
    %9 = vector.load %arg5[%c0_6, %c0_7, %c0_8] : memref<1x8x32xf32, #tpu.memory_space<vmem>>, vector<1x8x32xf32>
    tpu.vector_store %arg5[%c0_6, %c0_7, %c0_8], %8 {strides = array<i32>} : memref<1x8x32xf32, #tpu.memory_space<vmem>>, vector<1x8x32xf32>,
    return
  }
  func.func @transform_0(%arg0: i32, %arg1: i32) -> (i32, i32, i32) {
    %c0_i32 = arith.constant 0 : i32
    %c0_i32_0 = arith.constant 0 : i32
    return %arg0, %c0_i32, %arg1 : i32, i32, i32
  }
  func.func @transform_1(%arg0: i32, %arg1: i32) -> (i32, i32) {
    %c0_i32 = arith.constant 0 : i32
    %c0_i32_0 = arith.constant 0 : i32
    %c0_i32_1 = arith.constant 0 : i32
    return %c0_i32, %c0_i32_0 : i32, i32
  }
  func.func @transform_2(%arg0: i32, %arg1: i32) -> (i32, i32) {
    %c0_i32 = arith.constant 0 : i32
    %c0_i32_0 = arith.constant 0 : i32
    %c0_i32_1 = arith.constant 0 : i32
    return %c0_i32, %c0_i32_0 : i32, i32
  }
  func.func @transform_3(%arg0: i32, %arg1: i32) -> (i32, i32, i32) {
    %c0_i32 = arith.constant 0 : i32
    %c0_i32_0 = arith.constant 0 : i32
    return %arg0, %arg1, %c0_i32 : i32, i32, i32
  }
}

</mosaic_0001>

<bundles_post_ra>
// kernel: tpu_custom_call.1
= control target key start
LH: loop header
LB: loop body
LE: loop exit
PB: predicated region body
PF: predicated region fallthrough
CT: control target
= control target key end

     0   :  { %8 = vsyncpa [#allocation3], 0  ;;  %s699_s0 = inlined_call_operand.vmem [shape: f32[2,16,8], index: 0, kind: input, shape index: {}]   ;;  %s700_s1 = inlined_call_operand.vmem [shape: f32[16,32], index: 1, kind: input, shape index: {}]   ;;  %s701_s2 = inlined_call_operand.vmem [shape: f32[1,32], index: 2, kind: input, shape index: {}]   ;;  %s702_s3 = inlined_call_operand.hbm [shape: f32[2,8,32], index: 3, kind: output, shape index: {}]  }
   0x1   :  { %10 = vsyncpa [#allocation3 + $0x1], 0  ;;  %s585_s12 = smov 0   ;;  %s587_s13 = smov 0  }
   0x2   :  { %s589_s14 = smov 0   ;;  %s591_s15 = smov 0  }
   0x3   :  { %s593_s16 = smov 0   ;;  %s595_s17 = smov 0  }
   0x4 LB: > { %s402_s18 = sadd.s32 4294967295, %s560_s17   ;;  %s403_s19 = sadd.s32 4294967294, %s560_s17   ;;  %s560_s17 = sphi %s595_s17, %s16_s17   ;;  %s556_s16 = sphi %s593_s16, %s709_s16   ;;  %s552_s15 = sphi %s591_s15, %s708_s15   ;;  %s548_s14 = sphi %s589_s14, %s707_s14   ;;  %s544_s13 = sphi %s587_s13, %s706_s13   ;;  %s540_s12 = sphi %s585_s12, %s705_s12  }
   0x5   : > { %s28_s20 = sadd.s32 1, %s556_s16  ;;  %s107_s21 = sadd.s32 1, %s548_s14 }
   0x6   : > { %p30_p0 = scmp.ge.s32.totalorder %s28_s20, 2  ;;  %p117_p1 = scmp.ne.s32.totalorder %s548_s14, %s544_s13 }
   0x7   : > { %p118_p2 = scmp.eq.s32.totalorder %s402_s18, 1  ;;  %p123_p3 = scmp.ne.s32.totalorder %s544_s13, %s540_s12 }
   0x8   : > { %s711_s20 = smov (%p30_p0, %s28_s20), 0  ;;  %p124_p5 = scmp.eq.s32.totalorder %s403_s19, 1 }
   0x9   : > { %p625_p4 = por %p118_p2, %p117_p1  ;;  %s102_s23 = ssub.s32 %s556_s16, %s711_s20 }
   0xa   : > { %p406_p6 = scmp.ge.s32.totalorder %s560_s17, 1  ;;  %p105_p7 = scmp.eq.s32.totalorder %s102_s23, 0 }
   0xb   : > { %p632_p8 = por %p124_p5, %p123_p3  ;;  %p159_p9 = scmp.lt.s32.totalorder %s560_s17, 3 }
   0xc   : > { %s638_s25 = scalar_select %p105_p7, %s548_s14, %s107_s21  }
   0xd   : > { %p160_p10 = pnand %p406_p6, %p159_p9 }
   0xe   : > { %p186_p11 = scmp.lt.s32.totalorder (!%p160_p10), %s552_s15, 1  ;;  %s183_s8 = sand.u32 (!%p160_p10), 1, %s544_s13  }
   0xf   : > { %163 = sbr.rel (%p160_p10) target bundleno = 358 (0x166), region = 32  ;;  %s407_s9 = sshll.u32 (!%p160_p10), %s183_s8, 3 }
  0x10   : > { %s413_s18 = sshll.u32 (!%p160_p10), %s552_s15, 7  ;;  %s185_s19 = scalar_lea.vmem (!%p160_p10), [#allocation2], %s407_s9 }
  0x11   : > { %s328_s21 = sshll.u32 (!%p160_p10), %s185_s19, 4  ;;  %s659_s27 = scalar_lea.hbm (!%p160_p10), %s702_s3, %s413_s18  ;;  %s329_s21 = int_to_ptr.vmem [resolvable:$true] %s328_s21 }
  0x12   : > { %s314_s28 = scalar_lea.sflag (!%p160_p10), [#allocation3], %s183_s8  ;;  %s484_s29 = scalar_lea.vmem (!%p160_p10), %s329_s21, 128 }
  0x13   : > { %p485_p12 = scmp.ne.s32.totalorder (!%p160_p10), %s329_s21, %s484_s29 }
  0x14   : > { %v229_v0 = vld [vmem:[%s700_s1 + $0x8] sm:$0xff]  ;;  %v562_v1 = vmov 0.0   ;;  %v228_v2 = vld [vmem:[%s700_s1] sm:$0xff]  ;;  %vm563_vm0 = vmmov 0   ;;  %s187_s30 = scalar_select %p186_p11, %s552_s15, 1  ;;  %vm237_vm1 = vcmask 130048  }
  0x15   : > { %420 = vmatprep.subr.mxu0 %v562_v1  ;;  %424 = vmatprep.mubr.msk.f32.mxu0 %vm563_vm0, %v562_v1  ;;  %v410_v6 = vld [vmem:[%s701_s2] ss:$0 sm:$0xff]  ;;  %vm311_vm2 = vcmask 261120   ;;  %p486_p13 = pnand %p485_p12, %p625_p4  ;;  %s564_s15 = smov [#allocation2]  }
  0x16   : > { %421 = vmatpush3.msra.mxu0 %v229_v0  ;;  %s416_s4 = sshll.u32 %s187_s30, 4  ;;  %s488_s30 = sshll.u32 %s564_s15, 4  ;;  %s489_s30 = int_to_ptr.vmem [resolvable:$false] %s488_s30 }
  0x17   : > { %422 = vmatprep.subr.mxu0 %v562_v1  ;;  %s193_s7 = scalar_lea.vmem %s699_s0, %s416_s4  ;;  %p487_p0 = pneg %p486_p13 }
  0x18   : > { %423 = vmatpush3.msra.mxu0 %v228_v2  ;;  %v194_v3 = vld [vmem:[%s193_s7] sm:$0xff]  ;;  %v195_v4 = vld [vmem:[%s193_s7 + $0x8] sm:$0xff]  ;;  %s490_s4 = scalar_lea.vmem %s489_s30, 256  ;;  %p491_p1 = scmp.lt.s32.totalorder %s329_s21, %s489_s30 }
  0x19   : > { %196 = vxpose.xlu0.b32.start [1/2] (short) (narrow) %v194_v3, 8  ;;  %p492_p2 = scmp.lt.s32.totalorder %s490_s4, %s484_s29 }
  0x1b   : > { %p493_p3 = por %p492_p2, %p491_p1 }
  0x1d   : > { %197 = vxpose.xlu0.b32.end [2/2] (short) (narrow) %v195_v4, 8  ;;  %p494_p5 = pnand %p493_p3, %p487_p0 }
  0x95   : > { %v212_v5 = vpop.trf.xlu0 }
  0x96   : > { %425 = vmatmul.mubr.msk.f32.vlgmr.msra.gmra.mxu0 %vm237_vm1, %v212_v5 }
 0x156   : > { %v307_v7 = vpop.f32.mrf.mxu0 }
 0x157   : > { %v308_v8 = vadd.f32 %v410_v6, %v307_v7 }
 0x158   : > { %v426_v9 = vpop.f32.mrf.mxu0 }
 0x159   : > { %312 = vst.msk [vmem:[%s185_s19] sm:$0xff] %vm311_vm2, %v308_v8 }
 0x15a   : > { %497 = shalt.err (!%p494_p5)
}
 0x15b   : > { %s498_s5 = scalar_lea.hbm %s659_s27, 128  ;;  %s502_s8 = scalar_lea.hbm %s702_s3, 256 }
 0x15c   : > { %p499_p6 = scmp.ne.s32.totalorder %s659_s27, %s498_s5  ;;  %p503_p10 = scmp.lt.s32.totalorder %s659_s27, %s702_s3 }
 0x15d   : > { %p504_p11 = scmp.lt.s32.totalorder %s502_s8, %s498_s5 }
 0x15e   : > { %p500_p7 = pnand %p499_p6, %p625_p4 }
 0x15f   : > { %p505_p12 = por %p504_p11, %p503_p10 }
 0x160   : > { %p501_p9 = pneg %p500_p7 }
 0x162   : > { %p506_p13 = pnand %p505_p12, %p501_p9 }
 0x164   : > { %509 = shalt.err (!%p506_p13)
}
 0x165   : > { %427 = dma.vmem_to_hbm [thread:$0]  (%p625_p4), %s329_s21, 128, %s659_s27, %s314_s28  }
 0x166 PF: > { %p433_p0 = scmp.ge.s32.totalorder %s560_s17, 2  ;;  %s340_s11 = sand.u32 1, %s540_s12  }
 0x167   : > { %s341_s18 = scalar_lea.sflag [#allocation3], %s340_s11 }
 0x168   : > { %p430_p1 = pnand %p433_p0, %p632_p8 }
 0x16a   : > { %p431_p2 = pneg %p430_p1 }
 0x16c   : > { %535 = dma.done.wait (%p431_p2), %s341_s18, 128  }
 0x16d   : > { %537 = vsyncadd (%p431_p2), %s341_s18, 4294967168  ;;  %s16_s17 = sadd.s32 1, %s560_s17   ;;  %s705_s12 = smov %s544_s13 }
 0x16e   : > { %p13_p3 = scmp.ge.s32.totalorder %s16_s17, 4   ;;  %s706_s13 = smov %s548_s14 }
 0x16f   : > { %s707_s14 = smov %s638_s25  ;;  %s708_s15 = smov %s556_s16 }
 0x170   : > { %s709_s16 = smov %s711_s20  ;;  %15 = sbr.rel (!%p13_p3) target bundleno = 4 (0x4), region = 67 }
 0x175   :  { %346 = vsyncpa [#allocation3], 1 }
 0x176   :  { %348 = vsyncpa [#allocation3 + $0x1], 1 }

</bundles_post_ra>
